<compile_context>
chip_gen: v7x
topology: tpu7x:2x2x1
jax: 0.10.0
libtpu: 0.0.40
codegen_flags: <defaults>
</compile_context>

<pallas_src>
import functools

import jax
import jax.numpy as jnp
from jax.experimental import pallas as pl
from jax.experimental.pallas import tpu as pltpu

NEG_SLOPE = 0.01  # nn.LeakyReLU(0.01)


def _round_up(x, m):
    return ((x + m - 1) // m) * m


def _conv_lrelu_kernel(w_ref, b_ref, x_ref, o_ref, *, K, s, Wq, Lpad):
    """One (batch image) x (Cout tile) step.

    w_ref: (K*K, TCout, Cin)   compute dtype, tap-major weights
    b_ref: (TCout, 1)          float32 bias
    x_ref: (s*s, Cin, Lflat)   compute dtype, phase-split + flattened padded image
    o_ref: (TCout, Lpad)       out dtype, lane index j = ho*Wq + wo
    """
    acc = None
    for kh in range(K):
        for kw in range(K):
            ph = (kh % s) * s + (kw % s)        # stride-phase holding this tap
            off = (kh // s) * Wq + (kw // s)    # contiguous flat offset in that phase
            xs = x_ref[ph, :, off:off + Lpad]   # (Cin, Lpad) -- VMEM slice, no HBM copy
            d = jnp.dot(w_ref[kh * K + kw], xs,
                        preferred_element_type=jnp.float32)
            acc = d if acc is None else acc + d
    z = acc + b_ref[...]                        # (TCout, Lpad) + (TCout, 1) broadcast
    # LeakyReLU(0.01): max(z, 0.01*z) == z if z>=0 else 0.01*z (one VALU op).
    o_ref[...] = jnp.maximum(z, NEG_SLOPE * z).astype(o_ref.dtype)


def nonorm_conv2d(x_nchw, weight, bias, *, stride, padding,
                  compute_dtype=jnp.bfloat16, out_dtype=jnp.bfloat16):
    """Conv2d(kernel K, stride, padding) + LeakyReLU(0.01), NCHW in/out.

    x_nchw: (N, Cin, H, W); weight: (Cout, Cin, K, K) [PyTorch OIHW]; bias: (Cout,).
    """
    N, Cin, Hin, Win = x_nchw.shape
    Cout, Cin_w, KH, KW = weight.shape
    assert Cin == Cin_w, "channel mismatch"
    assert KH == KW, "square kernels only"  # TODO(synk): non-square kernel_size tuples
    K, s, p = KH, int(stride), int(padding)
    Hout = (Hin + 2 * p - K) // s + 1
    Wout = (Win + 2 * p - K) // s + 1
    assert Hout > 0 and Wout > 0, "non-positive conv output size"

    # ---------- input prep (cheap, bf16): zero-pad + stride-phase split + flatten ----------
    Hp, Wp = Hin + 2 * p, Win + 2 * p
    Hp_al, Wp_al = _round_up(Hp, s), _round_up(Wp, s)   # equal-size phases
    Hq, Wq = Hp_al // s, Wp_al // s                     # per-phase spatial size

    Lpad = _round_up(Hout * Wq, 128)                    # lane-dense output width
    dmax = (K - 1) // s
    max_off = dmax * Wq + dmax                          # largest in-kernel tap offset
    Lflat = _round_up(max(Hq * Wq, max_off + Lpad), 128)

    x = x_nchw.astype(compute_dtype)                    # cast BEFORE any layout pass
    x = jnp.pad(x, ((0, 0), (0, 0), (p, p + Hp_al - Hp), (p, p + Wp_al - Wp)))
    # (N, Cin, Hq, s, Wq, s) -> (N, py, px, Cin, Hq, Wq): phase (py, px) sub-images
    x = x.reshape(N, Cin, Hq, s, Wq, s).transpose(0, 3, 5, 1, 2, 4)
    x = x.reshape(N, s * s, Cin, Hq * Wq)
    x = jnp.pad(x, ((0, 0), (0, 0), (0, 0), (0, Lflat - Hq * Wq)))

    # ---------- weight / bias prep (tiny): tap-major, Cout padded/tiled ----------
    if Cout <= 256:
        TCout = _round_up(Cout, 8)      # >= 8 sublanes
        Cout_pad = TCout
    else:
        TCout = 256                      # fill MXU rows on v6e/v7x, multiple of 128 on v5e
        Cout_pad = _round_up(Cout, TCout)
    n_c = Cout_pad // TCout

    w = weight.astype(compute_dtype).transpose(2, 3, 0, 1).reshape(K * K, Cout, Cin)
    w = jnp.pad(w, ((0, 0), (0, Cout_pad - Cout), (0, 0)))
    b = jnp.pad(bias.astype(jnp.float32), (0, Cout_pad - Cout)).reshape(Cout_pad, 1)

    # ---------- VMEM-aware limit (double-buffered blocks + headroom) ----------
    esize = jnp.dtype(compute_dtype).itemsize
    osize = jnp.dtype(out_dtype).itemsize
    est = 2 * (K * K * TCout * Cin * esize      # weight tile
               + Cout_pad * 4                   # bias
               + s * s * Cin * Lflat * esize    # per-image input slab (resident)
               + TCout * Lpad * osize)          # output tile
    vmem_limit = int(min(max(2 * est + (4 << 20), 32 << 20), 64 << 20))

    kernel = functools.partial(_conv_lrelu_kernel, K=K, s=s, Wq=Wq, Lpad=Lpad)

    out = pl.pallas_call(
        kernel,
        out_shape=jax.ShapeDtypeStruct((N, Cout_pad, Lpad), out_dtype),
        grid_spec=pltpu.PrefetchScalarGridSpec(
            num_scalar_prefetch=0,
            grid=(N, n_c),                                   # batch x Cout tiles
            in_specs=[
                # weights: stream per Cout tile (constant over n when n_c == 1)
                pl.BlockSpec((K * K, TCout, Cin), lambda n, c: (0, c, 0)),
                # bias: per Cout tile
                pl.BlockSpec((TCout, 1), lambda n, c: (c, 0)),
                # input slab: depends only on n -> stays VMEM-resident across Cout tiles
                pl.BlockSpec((None, s * s, Cin, Lflat), lambda n, c: (n, 0, 0, 0)),
            ],
            out_specs=pl.BlockSpec((None, TCout, Lpad), lambda n, c: (n, c, 0)),
        ),
        compiler_params=pltpu.CompilerParams(
            dimension_semantics=("parallel", "parallel"),    # megacore-shardable
            vmem_limit_bytes=vmem_limit,
        ),
    )(w, b, x)

    # Drop Cout padding + the (Wq - Wout) wrap columns; reshape -> NCHW (no transpose).
    out = out[:, :Cout, :Hout * Wq].reshape(N, Cout, Hout, Wq)[:, :, :, :Wout]
    return out


def _reference(x, weight, bias, *, stride, padding):
    z = jax.lax.conv_general_dilated(
        x, weight, window_strides=(stride, stride),
        padding=((padding, padding), (padding, padding)),
        dimension_numbers=("NCHW", "OIHW", "NCHW"))
    z = z + bias[None, :, None, None]
    return jnp.where(z >= 0.0, z, NEG_SLOPE * z)


if __name__ == "__main__":
    cin, cout, K = 4, 8, 3
    N, Hin, Win = 2, 16, 16

    key = jax.random.PRNGKey(0)
    kx, kw_key, kb = jax.random.split(key, 3)
    x = jax.random.normal(kx, (N, cin, Hin, Win), jnp.float32)
    weight = 0.1 * jax.random.normal(kw_key, (cout, cin, K, K), jnp.float32)
    bias = 0.1 * jax.random.normal(kb, (cout,), jnp.float32)

    # stride 1 and stride 2 (exercises the stride-phase decomposition path)
    for s, p in [(1, 1), (2, 1)]:
        out = jax.block_until_ready(
            nonorm_conv2d(x, weight, bias, stride=s, padding=p))
        ref = _reference(x, weight, bias, stride=s, padding=p)
        assert out.shape == ref.shape, (out.shape, ref.shape)
        err = float(jnp.max(jnp.abs(out.astype(jnp.float32) - ref)))
        assert err < 5e-2, (s, p, err)  # bf16 operands/output, f32 MXU accumulation

    # odd spatial size -> exercises the Hq*Wq / Lpad padding paths
    x_odd = jax.random.normal(kx, (N, cin, 15, 15), jnp.float32)
    out = jax.block_until_ready(
        nonorm_conv2d(x_odd, weight, bias, stride=1, padding=1))
    ref = _reference(x_odd, weight, bias, stride=1, padding=1)
    assert out.shape == ref.shape
    assert float(jnp.max(jnp.abs(out.astype(jnp.float32) - ref))) < 5e-2

    print("KERNEL_OK")
</pallas_src>

<mosaic_0001>
module attributes {stable_mosaic.version = 11 : i64} {
  func.func @_conv_lrelu_kernel(%arg0: i32, %arg1: i32, %arg2: memref<9x8x4xbf16, #tpu.memory_space<vmem>>, %arg3: memref<8x1xf32, #tpu.memory_space<vmem>>, %arg4: memref<1x1x4x512xbf16, #tpu.memory_space<vmem>>, %arg5: memref<1x8x384xbf16, #tpu.memory_space<vmem>>) attributes {dimension_semantics = [#tpu.dimension_semantics<parallel>, #tpu.dimension_semantics<parallel>], iteration_bounds = array<i64: 2, 1>, scalar_prefetch = 0 : i64, scratch_operands = 0 : i64, tpu.core_type = #tpu.core_type<tc>, window_params = [{transform_indices = @transform_0, window_bounds = array<i64: 9, 8, 4>}, {transform_indices = @transform_1, window_bounds = array<i64: 8, 1>}, {transform_indices = @transform_2, window_bounds = array<i64: 1, 1, 4, 512>}, {transform_indices = @transform_3, window_bounds = array<i64: 1, 8, 384>}]} {
    %c0 = arith.constant 0 : index
    %c0_0 = arith.constant 0 : index
    %c0_1 = arith.constant 0 : index
    %c0_2 = arith.constant 0 : index
    %0 = vector.load %arg4[%c0, %c0_0, %c0_1, %c0_2] : memref<1x1x4x512xbf16, #tpu.memory_space<vmem>>, vector<1x1x4x384xbf16>
    %1 = vector.shape_cast %0 : vector<1x1x4x384xbf16> to vector<4x384xbf16>
    %c0_3 = arith.constant 0 : index
    %c0_4 = arith.constant 0 : index
    %c0_5 = arith.constant 0 : index
    %2 = vector.load %arg2[%c0_3, %c0_4, %c0_5] : memref<9x8x4xbf16, #tpu.memory_space<vmem>>, vector<1x8x4xbf16>
    %3 = vector.shape_cast %2 : vector<1x8x4xbf16> to vector<8x4xbf16>
    %cst = arith.constant dense<0.000000e+00> : vector<8x384xf32>
    %4 = tpu.matmul %3, %1, %cst {dimension_numbers = #tpu.dot_dimension_numbers<[1], [0], [0], [1], [0, 0, 1, 1], [], []>} : vector<8x4xbf16>, vector<4x384xbf16>, vector<8x384xf32> -> vector<8x384xf32>
    %c0_6 = arith.constant 0 : index
    %c0_7 = arith.constant 0 : index
    %c0_8 = arith.constant 0 : index
    %c1 = arith.constant 1 : index
    %5 = vector.load %arg4[%c0_6, %c0_7, %c0_8, %c1] : memref<1x1x4x512xbf16, #tpu.memory_space<vmem>>, vector<1x1x4x384xbf16>
    %6 = vector.shape_cast %5 : vector<1x1x4x384xbf16> to vector<4x384xbf16>
    %c1_9 = arith.constant 1 : index
    %c0_10 = arith.constant 0 : index
    %c0_11 = arith.constant 0 : index
    %7 = vector.load %arg2[%c1_9, %c0_10, %c0_11] : memref<9x8x4xbf16, #tpu.memory_space<vmem>>, vector<1x8x4xbf16>
    %8 = vector.shape_cast %7 : vector<1x8x4xbf16> to vector<8x4xbf16>
    %cst_12 = arith.constant dense<0.000000e+00> : vector<8x384xf32>
    %9 = tpu.matmul %8, %6, %cst_12 {dimension_numbers = #tpu.dot_dimension_numbers<[1], [0], [0], [1], [0, 0, 1, 1], [], []>} : vector<8x4xbf16>, vector<4x384xbf16>, vector<8x384xf32> -> vector<8x384xf32>
    %10 = arith.addf %4, %9 : vector<8x384xf32>
    %c0_13 = arith.constant 0 : index
    %c0_14 = arith.constant 0 : index
    %c0_15 = arith.constant 0 : index
    %c2 = arith.constant 2 : index
    %11 = vector.load %arg4[%c0_13, %c0_14, %c0_15, %c2] : memref<1x1x4x512xbf16, #tpu.memory_space<vmem>>, vector<1x1x4x384xbf16>
    %12 = vector.shape_cast %11 : vector<1x1x4x384xbf16> to vector<4x384xbf16>
    %c2_16 = arith.constant 2 : index
    %c0_17 = arith.constant 0 : index
    %c0_18 = arith.constant 0 : index
    %13 = vector.load %arg2[%c2_16, %c0_17, %c0_18] : memref<9x8x4xbf16, #tpu.memory_space<vmem>>, vector<1x8x4xbf16>
    %14 = vector.shape_cast %13 : vector<1x8x4xbf16> to vector<8x4xbf16>
    %cst_19 = arith.constant dense<0.000000e+00> : vector<8x384xf32>
    %15 = tpu.matmul %14, %12, %cst_19 {dimension_numbers = #tpu.dot_dimension_numbers<[1], [0], [0], [1], [0, 0, 1, 1], [], []>} : vector<8x4xbf16>, vector<4x384xbf16>, vector<8x384xf32> -> vector<8x384xf32>
    %16 = arith.addf %10, %15 : vector<8x384xf32>
    %c0_20 = arith.constant 0 : index
    %c0_21 = arith.constant 0 : index
    %c0_22 = arith.constant 0 : index
    %c18 = arith.constant 18 : index
    %17 = vector.load %arg4[%c0_20, %c0_21, %c0_22, %c18] : memref<1x1x4x512xbf16, #tpu.memory_space<vmem>>, vector<1x1x4x384xbf16>
    %18 = vector.shape_cast %17 : vector<1x1x4x384xbf16> to vector<4x384xbf16>
    %c3 = arith.constant 3 : index
    %c0_23 = arith.constant 0 : index
    %c0_24 = arith.constant 0 : index
    %19 = vector.load %arg2[%c3, %c0_23, %c0_24] : memref<9x8x4xbf16, #tpu.memory_space<vmem>>, vector<1x8x4xbf16>
    %20 = vector.shape_cast %19 : vector<1x8x4xbf16> to vector<8x4xbf16>
    %cst_25 = arith.constant dense<0.000000e+00> : vector<8x384xf32>
    %21 = tpu.matmul %20, %18, %cst_25 {dimension_numbers = #tpu.dot_dimension_numbers<[1], [0], [0], [1], [0, 0, 1, 1], [], []>} : vector<8x4xbf16>, vector<4x384xbf16>, vector<8x384xf32> -> vector<8x384xf32>
    %22 = arith.addf %16, %21 : vector<8x384xf32>
    %c0_26 = arith.constant 0 : index
    %c0_27 = arith.constant 0 : index
    %c0_28 = arith.constant 0 : index
    %c19 = arith.constant 19 : index
    %23 = vector.load %arg4[%c0_26, %c0_27, %c0_28, %c19] : memref<1x1x4x512xbf16, #tpu.memory_space<vmem>>, vector<1x1x4x384xbf16>
    %24 = vector.shape_cast %23 : vector<1x1x4x384xbf16> to vector<4x384xbf16>
    %c4 = arith.constant 4 : index
    %c0_29 = arith.constant 0 : index
    %c0_30 = arith.constant 0 : index
    %25 = vector.load %arg2[%c4, %c0_29, %c0_30] : memref<9x8x4xbf16, #tpu.memory_space<vmem>>, vector<1x8x4xbf16>
    %26 = vector.shape_cast %25 : vector<1x8x4xbf16> to vector<8x4xbf16>
    %cst_31 = arith.constant dense<0.000000e+00> : vector<8x384xf32>
    %27 = tpu.matmul %26, %24, %cst_31 {dimension_numbers = #tpu.dot_dimension_numbers<[1], [0], [0], [1], [0, 0, 1, 1], [], []>} : vector<8x4xbf16>, vector<4x384xbf16>, vector<8x384xf32> -> vector<8x384xf32>
    %28 = arith.addf %22, %27 : vector<8x384xf32>
    %c0_32 = arith.constant 0 : index
    %c0_33 = arith.constant 0 : index
    %c0_34 = arith.constant 0 : index
    %c20 = arith.constant 20 : index
    %29 = vector.load %arg4[%c0_32, %c0_33, %c0_34, %c20] : memref<1x1x4x512xbf16, #tpu.memory_space<vmem>>, vector<1x1x4x384xbf16>
    %30 = vector.shape_cast %29 : vector<1x1x4x384xbf16> to vector<4x384xbf16>
    %c5 = arith.constant 5 : index
    %c0_35 = arith.constant 0 : index
    %c0_36 = arith.constant 0 : index
    %31 = vector.load %arg2[%c5, %c0_35, %c0_36] : memref<9x8x4xbf16, #tpu.memory_space<vmem>>, vector<1x8x4xbf16>
    %32 = vector.shape_cast %31 : vector<1x8x4xbf16> to vector<8x4xbf16>
    %cst_37 = arith.constant dense<0.000000e+00> : vector<8x384xf32>
    %33 = tpu.matmul %32, %30, %cst_37 {dimension_numbers = #tpu.dot_dimension_numbers<[1], [0], [0], [1], [0, 0, 1, 1], [], []>} : vector<8x4xbf16>, vector<4x384xbf16>, vector<8x384xf32> -> vector<8x384xf32>
    %34 = arith.addf %28, %33 : vector<8x384xf32>
    %c0_38 = arith.constant 0 : index
    %c0_39 = arith.constant 0 : index
    %c0_40 = arith.constant 0 : index
    %c36 = arith.constant 36 : index
    %35 = vector.load %arg4[%c0_38, %c0_39, %c0_40, %c36] : memref<1x1x4x512xbf16, #tpu.memory_space<vmem>>, vector<1x1x4x384xbf16>
    %36 = vector.shape_cast %35 : vector<1x1x4x384xbf16> to vector<4x384xbf16>
    %c6 = arith.constant 6 : index
    %c0_41 = arith.constant 0 : index
    %c0_42 = arith.constant 0 : index
    %37 = vector.load %arg2[%c6, %c0_41, %c0_42] : memref<9x8x4xbf16, #tpu.memory_space<vmem>>, vector<1x8x4xbf16>
    %38 = vector.shape_cast %37 : vector<1x8x4xbf16> to vector<8x4xbf16>
    %cst_43 = arith.constant dense<0.000000e+00> : vector<8x384xf32>
    %39 = tpu.matmul %38, %36, %cst_43 {dimension_numbers = #tpu.dot_dimension_numbers<[1], [0], [0], [1], [0, 0, 1, 1], [], []>} : vector<8x4xbf16>, vector<4x384xbf16>, vector<8x384xf32> -> vector<8x384xf32>
    %40 = arith.addf %34, %39 : vector<8x384xf32>
    %c0_44 = arith.constant 0 : index
    %c0_45 = arith.constant 0 : index
    %c0_46 = arith.constant 0 : index
    %c37 = arith.constant 37 : index
    %41 = vector.load %arg4[%c0_44, %c0_45, %c0_46, %c37] : memref<1x1x4x512xbf16, #tpu.memory_space<vmem>>, vector<1x1x4x384xbf16>
    %42 = vector.shape_cast %41 : vector<1x1x4x384xbf16> to vector<4x384xbf16>
    %c7 = arith.constant 7 : index
    %c0_47 = arith.constant 0 : index
    %c0_48 = arith.constant 0 : index
    %43 = vector.load %arg2[%c7, %c0_47, %c0_48] : memref<9x8x4xbf16, #tpu.memory_space<vmem>>, vector<1x8x4xbf16>
    %44 = vector.shape_cast %43 : vector<1x8x4xbf16> to vector<8x4xbf16>
    %cst_49 = arith.constant dense<0.000000e+00> : vector<8x384xf32>
    %45 = tpu.matmul %44, %42, %cst_49 {dimension_numbers = #tpu.dot_dimension_numbers<[1], [0], [0], [1], [0, 0, 1, 1], [], []>} : vector<8x4xbf16>, vector<4x384xbf16>, vector<8x384xf32> -> vector<8x384xf32>
    %46 = arith.addf %40, %45 : vector<8x384xf32>
    %c0_50 = arith.constant 0 : index
    %c0_51 = arith.constant 0 : index
    %c0_52 = arith.constant 0 : index
    %c38 = arith.constant 38 : index
    %47 = vector.load %arg4[%c0_50, %c0_51, %c0_52, %c38] : memref<1x1x4x512xbf16, #tpu.memory_space<vmem>>, vector<1x1x4x384xbf16>
    %48 = vector.shape_cast %47 : vector<1x1x4x384xbf16> to vector<4x384xbf16>
    %c8 = arith.constant 8 : index
    %c0_53 = arith.constant 0 : index
    %c0_54 = arith.constant 0 : index
    %49 = vector.load %arg2[%c8, %c0_53, %c0_54] : memref<9x8x4xbf16, #tpu.memory_space<vmem>>, vector<1x8x4xbf16>
    %50 = vector.shape_cast %49 : vector<1x8x4xbf16> to vector<8x4xbf16>
    %cst_55 = arith.constant dense<0.000000e+00> : vector<8x384xf32>
    %51 = tpu.matmul %50, %48, %cst_55 {dimension_numbers = #tpu.dot_dimension_numbers<[1], [0], [0], [1], [0, 0, 1, 1], [], []>} : vector<8x4xbf16>, vector<4x384xbf16>, vector<8x384xf32> -> vector<8x384xf32>
    %52 = arith.addf %46, %51 : vector<8x384xf32>
    %c0_56 = arith.constant 0 : index
    %c0_57 = arith.constant 0 : index
    %53 = vector.load %arg3[%c0_56, %c0_57] : memref<8x1xf32, #tpu.memory_space<vmem>>, vector<8x1xf32>
    %54 = vector.broadcast %53 : vector<8x1xf32> to vector<8x384xf32>
    %55 = arith.addf %52, %54 : vector<8x384xf32>
    %cst_58 = arith.constant 0.00999999977 : f32
    %56 = vector.broadcast %cst_58 : f32 to vector<8x384xf32>
    %57 = arith.mulf %56, %55 : vector<8x384xf32>
    %58 = arith.maximumf %55, %57 : vector<8x384xf32>
    %59 = arith.truncf %58 : vector<8x384xf32> to vector<8x384xbf16>
    %c0_59 = arith.constant 0 : index
    %c0_60 = arith.constant 0 : index
    %c0_61 = arith.constant 0 : index
    %60 = vector.load %arg5[%c0_59, %c0_60, %c0_61] : memref<1x8x384xbf16, #tpu.memory_space<vmem>>, vector<1x8x384xbf16>
    %61 = vector.shape_cast %60 : vector<1x8x384xbf16> to vector<8x384xbf16>
    %62 = vector.shape_cast %59 : vector<8x384xbf16> to vector<1x8x384xbf16>
    tpu.vector_store %arg5[%c0_59, %c0_60, %c0_61], %62 {strides = array<i32>} : memref<1x8x384xbf16, #tpu.memory_space<vmem>>, vector<1x8x384xbf16>,
    return
  }
  func.func @transform_0(%arg0: i32, %arg1: i32) -> (i32, i32, i32) {
    %c0_i32 = arith.constant 0 : i32
    %c0_i32_0 = arith.constant 0 : i32
    %c0_i32_1 = arith.constant 0 : i32
    return %c0_i32, %arg1, %c0_i32_0 : i32, i32, i32
  }
  func.func @transform_1(%arg0: i32, %arg1: i32) -> (i32, i32) {
    %c0_i32 = arith.constant 0 : i32
    %c0_i32_0 = arith.constant 0 : i32
    return %arg1, %c0_i32 : i32, i32
  }
  func.func @transform_2(%arg0: i32, %arg1: i32) -> (i32, i32, i32, i32) {
    %c0_i32 = arith.constant 0 : i32
    %c0_i32_0 = arith.constant 0 : i32
    %c0_i32_1 = arith.constant 0 : i32
    %c0_i32_2 = arith.constant 0 : i32
    return %arg0, %c0_i32, %c0_i32_0, %c0_i32_1 : i32, i32, i32, i32
  }
  func.func @transform_3(%arg0: i32, %arg1: i32) -> (i32, i32, i32) {
    %c0_i32 = arith.constant 0 : i32
    %c0_i32_0 = arith.constant 0 : i32
    return %arg0, %arg1, %c0_i32 : i32, i32, i32
  }
}

</mosaic_0001>

<bundles_post_ra>
// kernel: tpu_custom_call.1
= control target key start
LH: loop header
LB: loop body
LE: loop exit
PB: predicated region body
PF: predicated region fallthrough
CT: control target
= control target key end

     0   :  { %8 = vsyncpa [#allocation3], 0  ;;  %s2053_s0 = inlined_call_operand.vmem [shape: bf16[9,8,4], index: 0, kind: input, shape index: {}]   ;;  %s2054_s1 = inlined_call_operand.vmem [shape: f32[8,1], index: 1, kind: input, shape index: {}]   ;;  %s2055_s2 = inlined_call_operand.vmem [shape: bf16[2,1,4,512], index: 2, kind: input, shape index: {}]   ;;  %s2056_s3 = inlined_call_operand.hbm [shape: bf16[2,8,384], index: 3, kind: output, shape index: {}]  }
   0x1   :  { %10 = vsyncpa [#allocation3 + $0x1], 0  ;;  %s1817_s12 = smov 0   ;;  %s1819_s13 = smov 0  }
   0x2   :  { %s1821_s14 = smov 0   ;;  %s1823_s15 = smov 0  }
   0x3   :  { %s1825_s16 = smov 0   ;;  %s1827_s17 = smov 0  }
   0x4 LB: > { %s1508_s18 = sadd.s32 4294967295, %s1782_s17   ;;  %s1509_s19 = sadd.s32 4294967294, %s1782_s17   ;;  %s1782_s17 = sphi %s1827_s17, %s16_s17   ;;  %s1778_s16 = sphi %s1825_s16, %s2063_s16   ;;  %s1774_s15 = sphi %s1823_s15, %s2062_s15   ;;  %s1770_s14 = sphi %s1821_s14, %s2061_s14   ;;  %s1766_s13 = sphi %s1819_s13, %s2060_s13   ;;  %s1762_s12 = sphi %s1817_s12, %s2059_s12  }
   0x5   : > { %s28_s20 = sadd.s32 1, %s1778_s16  ;;  %s115_s21 = sadd.s32 1, %s1770_s14 }
   0x6   : > { %p30_p0 = scmp.ge.s32.totalorder %s28_s20, 2  ;;  %p125_p1 = scmp.ne.s32.totalorder %s1770_s14, %s1766_s13 }
   0x7   : > { %p126_p2 = scmp.eq.s32.totalorder %s1508_s18, 1  ;;  %p131_p3 = scmp.ne.s32.totalorder %s1766_s13, %s1762_s12 }
   0x8   : > { %s2065_s20 = smov (%p30_p0, %s28_s20), 0  ;;  %p132_p5 = scmp.eq.s32.totalorder %s1509_s19, 1 }
   0x9   : > { %p1857_p4 = por %p126_p2, %p125_p1  ;;  %s110_s23 = ssub.s32 %s1778_s16, %s2065_s20 }
   0xa   : > { %p1514_p6 = scmp.ge.s32.totalorder %s1782_s17, 1  ;;  %p113_p7 = scmp.eq.s32.totalorder %s110_s23, 0 }
   0xb   : > { %p1864_p8 = por %p132_p5, %p131_p3  ;;  %p172_p9 = scmp.lt.s32.totalorder %s1782_s17, 3 }
   0xc   : > { %s1870_s25 = scalar_select %p113_p7, %s1770_s14, %s115_s21  }
   0xd   : > { %p173_p10 = pnand %p1514_p6, %p172_p9 }
   0xe   : > { %p212_p11 = scmp.lt.s32.totalorder (!%p173_p10), %s1774_s15, 1  ;;  %v228_v0 = vlaneseq (!%p173_p10)  ;;  %v1784_v1 = vmov (!%p173_p10), 1983009808   ;;  %v1785_v5 = vmov (!%p173_p10), 0.0   ;;  %v1786_v6 = vmov (!%p173_p10), 0   ;;  %s1788_s4 = smov (!%p173_p10), 127  }
   0xf   : > { %176 = sbr.rel (%p173_p10) target bundleno = 455 (0x1c7), region = 32  ;;  %v226_v2 = vunpack.c.l.s4 (!%p173_p10), %v1784_v1  ;;  %1578 = vmatprep.subr.bf16.mxu1 (!%p173_p10), %v1785_v5  ;;  %299 = vmatprep.mubr.bf16.mxu0 (!%p173_p10), %v1786_v6  ;;  %vm1787_vm0 = vmmov (!%p173_p10), 0   ;;  %s1789_s5 = smov (!%p173_p10), 126   ;;  %v1361_v18 = vld [vmem:[%s2054_s1] sm:$0xff] (!%p173_p10)  ;;  %vm249_vm1 = vcmask (!%p173_p10), 1039360   ;;  %vm257_vm2 = vcmask (!%p173_p10), 1041408  }
  0x10   : > { %v229_v3 = vshrl.u32 (!%p173_p10), %v228_v0, 7  ;;  %1701 = vset.pattern.permute.xlu0 (!%p173_p10), %v1786_v6  ;;  %1580 = vmatprep.mubr.msk.bf16.mxu1 (!%p173_p10), %vm1787_vm0, %v1785_v5  ;;  %s1790_s6 = smov (!%p173_p10), 110   ;;  %s1791_s7 = smov (!%p173_p10), 109   ;;  %v1517_v28 = vld [vmem:[%s2053_s0 + $0x4] sm:$0xf] (!%p173_p10)  ;;  %vm253_vm3 = vcmask (!%p173_p10), 31744  }
  0x11   : > { %v227_v4 = vunpack.c.0.s8 (!%p173_p10), %v226_v2  ;;  %s1792_s8 = smov (!%p173_p10), 108   ;;  %s1793_s9 = smov (!%p173_p10), 92   ;;  %vm487_vm4 = vcmask (!%p173_p10), 1031168   ;;  %v219_v39 = vld [vmem:[%s2053_s0] sm:$0xf] (!%p173_p10)  ;;  %vm616_vm5 = vcmask (!%p173_p10), 900096  }
  0x12   : > { %s1794_s10 = smov (!%p173_p10), 91   ;;  %s1795_s11 = smov (!%p173_p10), 90   ;;  %v1524_v49 = vld [vmem:[%s2053_s0 + $0x8] sm:$0xf] (!%p173_p10)  ;;  %vm745_vm6 = vcmask (!%p173_p10), 891904   ;;  %vm874_vm7 = vcmask (!%p173_p10), 883712  }
  0x13   : > { %v230_v7 = vsub.s32 (!%p173_p10), %v227_v4, %v229_v3  ;;  %v1528_v59 = vld [vmem:[%s2053_s0 + $0xc] sm:$0xf] (!%p173_p10)  ;;  %vm1003_vm8 = vcmask (!%p173_p10), 752640   ;;  %vm1132_vm9 = vcmask (!%p173_p10), 744448   ;;  %vm1261_vm10 = vcmask (!%p173_p10), 736256   ;;  %s201_s23 = sand.u32 (!%p173_p10), 1, %s1766_s13  }
  0x16   : > { %s213_s26 = scalar_select %p212_p11, %s1774_s15, 1 }
  0x18   : > { %s1557_s27 = sshll.u32 %s213_s26, 3  ;;  %s1632_s26 = smul.u32 12, %s201_s23 }
  0x19   : > { %s216_s30 = scalar_lea.vmem %s2055_s2, %s1557_s27  ;;  %s1633_s27 = smul.u32 192, %s1774_s15 }
  0x1a   : > { %v220_v8 = vld [vmem:[%s216_s30] sm:$0xff]  ;;  %s203_s28 = scalar_lea.vmem [#allocation2], %s1632_s26  ;;  %s1392_s15 = scalar_lea.sflag [#allocation3], %s201_s23 }
  0x1b   : > { %v218_v9 = vld [vmem:[%s216_s30] sm:$0x3f]  ;;  %v231_v10 = vrot.slane %v220_v8, %v230_v7  ;;  %v224_v11 = vcombine.high %v220_v8, %v220_v8  ;;  %s1408_s29 = sshll.u32 %s203_s28, 4  ;;  %s2006_s29 = int_to_ptr.vmem [resolvable:$true] %s1408_s29 }
  0x1c   : > { %v1882_v12 = vrot.slane %v218_v9, %v230_v7  ;;  %v349_v13 = vcombine.high %v218_v9, %v218_v9 }
  0x1d   : > { %241 = vrot.lane.b32.xlu0 %v231_v10, %s1788_s4  ;;  %v239_v14 = vcombine.high %v231_v10, %v231_v10  ;;  %v238_v15 = vrot.slane %v224_v11, %v230_v7 }
  0x1e   : > { %v1884_v16 = vrot.slane %v349_v13, %v230_v7  ;;  %v364_v22 = vcombine.high %v1882_v12, %v1882_v12  ;;  %v369_v31 = vsel %vm257_vm2, %v1882_v12, 0  ;;  %v1532_v7 = vld [vmem:[%s2053_s0 + $0x10] sm:$0xf] }
  0x1f   : > { %245 = vrot.lane.b32.xlu1 %v238_v15, %s1788_s4  ;;  %v240_v17 = vcombine.high %v238_v15, %v238_v15 }
  0x20   : > { %v375_v33 = vsel %vm257_vm2, %v1884_v16, 0 }
  0x21   : > { %243 = vrot.lane.b32.xlu0 %v239_v14, %s1788_s4 }
  0x23   : > { %247 = vrot.lane.b32.xlu1 %v240_v17, %s1788_s4 }
  0x25   : > { %479 = vrot.lane.b32.xlu0 %v231_v10, %s1789_s5 }
  0x27   : > { %481 = vrot.lane.b32.xlu1 %v239_v14, %s1789_s5 }
  0x29   : > { %483 = vrot.lane.b32.xlu0 %v238_v15, %s1789_s5 }
  0x2b   : > { %485 = vrot.lane.b32.xlu1 %v240_v17, %s1789_s5  ;;  %s2004_s5 = scalar_lea.hbm %s2056_s3, %s1633_s27 }
  0x2d   : > { %608 = vrot.lane.b32.xlu0 %v231_v10, %s1790_s6 }
  0x2f   : > { %610 = vrot.lane.b32.xlu1 %v239_v14, %s1790_s6 }
  0x31   : > { %612 = vrot.lane.b32.xlu0 %v238_v15, %s1790_s6 }
  0x33   : > { %614 = vrot.lane.b32.xlu1 %v240_v17, %s1790_s6  ;;  %s1704_s6 = scalar_lea.vmem %s2006_s29, 192 }
  0x34   : > { %p1705_p12 = scmp.ne.s32.totalorder %s2006_s29, %s1704_s6 }
  0x35   : > { %737 = vrot.lane.b32.xlu0 %v231_v10, %s1791_s7 }
  0x36   : > { %p1706_p13 = pnand %p1705_p12, %p1857_p4 }
  0x37   : > { %739 = vrot.lane.b32.xlu1 %v239_v14, %s1791_s7 }
  0x38   : > { %p1707_p0 = pneg %p1706_p13 }
  0x39   : > { %741 = vrot.lane.b32.xlu0 %v238_v15, %s1791_s7 }
  0x3b   : > { %743 = vrot.lane.b32.xlu1 %v240_v17, %s1791_s7  ;;  %s1796_s7 = smov [#allocation2]  }
  0x3d   : > { %866 = vrot.lane.b32.xlu0 %v231_v10, %s1792_s8 }
  0x3f   : > { %868 = vrot.lane.b32.xlu1 %v239_v14, %s1792_s8 }
  0x41   : > { %870 = vrot.lane.b32.xlu0 %v238_v15, %s1792_s8 }
  0x43   : > { %872 = vrot.lane.b32.xlu1 %v240_v17, %s1792_s8  ;;  %s1708_s8 = sshll.u32 %s1796_s7, 4  ;;  %s1709_s8 = int_to_ptr.vmem [resolvable:$false] %s1708_s8 }
  0x44   : > { %p1711_p1 = scmp.lt.s32.totalorder %s2006_s29, %s1709_s8 }
  0x45   : > { %995 = vrot.lane.b32.xlu0 %v231_v10, %s1793_s9 }
  0x47   : > { %997 = vrot.lane.b32.xlu1 %v239_v14, %s1793_s9 }
  0x49   : > { %999 = vrot.lane.b32.xlu0 %v238_v15, %s1793_s9 }
  0x4b   : > { %1001 = vrot.lane.b32.xlu1 %v240_v17, %s1793_s9  ;;  %s1710_s9 = scalar_lea.vmem %s1709_s8, 384 }
  0x4c   : > { %p1712_p2 = scmp.lt.s32.totalorder %s1710_s9, %s1704_s6 }
  0x4d   : > { %1124 = vrot.lane.b32.xlu0 %v231_v10, %s1794_s10 }
  0x4e   : > { %p1713_p3 = por %p1712_p2, %p1711_p1 }
  0x4f   : > { %1126 = vrot.lane.b32.xlu1 %v239_v14, %s1794_s10 }
  0x50   : > { %p1714_p5 = pnand %p1713_p3, %p1707_p0 }
  0x51   : > { %1128 = vrot.lane.b32.xlu0 %v238_v15, %s1794_s10 }
  0x53   : > { %1130 = vrot.lane.b32.xlu1 %v240_v17, %s1794_s10 }
  0x55   : > { %1253 = vrot.lane.b32.xlu0 %v231_v10, %s1795_s11 }
  0x57   : > { %1255 = vrot.lane.b32.xlu1 %v239_v14, %s1795_s11 }
  0x59   : > { %1257 = vrot.lane.b32.xlu0 %v238_v15, %s1795_s11 }
  0x5b   : > { %1259 = vrot.lane.b32.xlu1 %v240_v17, %s1795_s11  ;;  %v1536_v17 = vld [vmem:[%s2053_s0 + $0x14] sm:$0xf] }
  0x5d   : > { %1364 = vperm.xlu0 %1701, %v1361_v18  }
  0x8f   : > { %v242_v19 = vpop.permute.xlu0 %241 }
  0x91   : > { %v246_v20 = vpop.permute.xlu1 %245 }
  0x93   : > { %v244_v21 = vpop.permute.xlu0 %243 }
  0x94   : > { %v251_v23 = vsel %vm249_vm1, %v244_v21, %v246_v20  ;;  %v250_v24 = vsel %vm249_vm1, %v242_v19, %v244_v21 }
  0x95   : > { %1518 = vmatprep.subr.msk.bf16.mxu0 %vm257_vm2, %v251_v23  ;;  %v248_v25 = vpop.permute.xlu1 %247  ;;  %v259_v26 = vsel %vm257_vm2, %v250_v24, 0 }
  0x96   : > { %268 = vmatpush1.bf16.msra.mxu0 %v259_v26  ;;  %v252_v27 = vsel %vm249_vm1, %v246_v20, %v248_v25 }
  0x97   : > { %v265_v29 = vsel %vm257_vm2, %v252_v27, 0  ;;  %v480_v30 = vpop.permute.xlu0 %479  ;;  %1521 = vmatprep.subr.msk.bf16.mxu0 %vm257_vm2, %v364_v22  ;;  %v1540_v27 = vld [vmem:[%s2053_s0 + $0x18] sm:$0xf] }
  0x98   : > { %1579 = vmatpush3.bf16.msra.mxu1 %v265_v29 }
  0x99   : > { %1519 = vmatmul.mubr.msk.bf16.vlgmr.msra.gmra.mrb[0].mxu0 %vm253_vm3, %v1517_v28  ;;  %1584 = vmatprep.subr.bf16.mxu1 %v1785_v5  ;;  %v482_v32 = vpop.permute.xlu1 %481 }
  0x9a   : > { %378 = vmatpush1.bf16.msra.mxu0 %v369_v31  ;;  %409 = vmatprep.mubr.bf16.mxu0 %v1786_v6  ;;  %v488_v35 = vsel %vm487_vm4, %v480_v30, %v482_v32 }
  0x9b   : > { %1581 = vmatmul.mubr.msk.bf16.vlgmr.msra.gmra.mrb[0].mxu1 %vm253_vm3, %v1517_v28  ;;  %v484_v34 = vpop.permute.xlu0 %483  ;;  %v495_v40 = vsel %vm257_vm2, %v488_v35, 0 }
  0x9c   : > { %1585 = vmatpush3.bf16.msra.mxu1 %v375_v33  ;;  %v489_v36 = vsel %vm487_vm4, %v482_v32, %v484_v34  ;;  %1586 = vmatprep.mubr.msk.bf16.mxu1 %vm1787_vm0, %v1785_v5 }
  0x9d   : > { %1525 = vmatprep.subr.msk.bf16.mxu0 %vm257_vm2, %v489_v36  ;;  %v486_v37 = vpop.permute.xlu1 %485  ;;  %1590 = vmatprep.subr.bf16.mxu1 %v1785_v5 }
  0x9e   : > { %v490_v38 = vsel %vm487_vm4, %v484_v34, %v486_v37  ;;  %v1544_v37 = vld [vmem:[%s2053_s0 + $0x1c] sm:$0xf] }
  0x9f   : > { %v609_v41 = vpop.permute.xlu0 %608  ;;  %v501_v42 = vsel %vm257_vm2, %v490_v38, 0 }
  0xa1   : > { %1522 = vmatmul.mubr.msk.bf16.vlgmr.msra.gmra.mrb[4].mxu0 %vm253_vm3, %v219_v39  ;;  %v611_v43 = vpop.permute.xlu1 %610 }
  0xa2   : > { %504 = vmatpush1.bf16.msra.mxu0 %v495_v40  ;;  %535 = vmatprep.mubr.bf16.mxu0 %v1786_v6  ;;  %v617_v45 = vsel %vm616_vm5, %v609_v41, %v611_v43  ;;  %v1548_v40 = vld [vmem:[%s2053_s0 + $0x20] sm:$0xf] }
  0xa3   : > { %1587 = vmatmul.mubr.msk.bf16.vlgmr.msra.gmra.mrb[4].mxu1 %vm253_vm3, %v219_v39  ;;  %v613_v44 = vpop.permute.xlu0 %612  ;;  %v624_v50 = vsel %vm257_vm2, %v617_v45, 0 }
  0xa4   : > { %1591 = vmatpush3.bf16.msra.mxu1 %v501_v42  ;;  %v618_v46 = vsel %vm616_vm5, %v611_v43, %v613_v44  ;;  %1592 = vmatprep.mubr.msk.bf16.mxu1 %vm1787_vm0, %v1785_v5 }
  0xa5   : > { %1529 = vmatprep.subr.msk.bf16.mxu0 %vm257_vm2, %v618_v46  ;;  %v615_v47 = vpop.permute.xlu1 %614  ;;  %1596 = vmatprep.subr.bf16.mxu1 %v1785_v5 }
  0xa6   : > { %v619_v48 = vsel %vm616_vm5, %v613_v44, %v615_v47 }
  0xa7   : > { %v738_v51 = vpop.permute.xlu0 %737  ;;  %v630_v52 = vsel %vm257_vm2, %v619_v48, 0 }
  0xa9   : > { %1526 = vmatmul.mubr.msk.bf16.vlgmr.msra.gmra.mrb[8].mxu0 %vm253_vm3, %v1524_v49  ;;  %v740_v53 = vpop.permute.xlu1 %739 }
  0xaa   : > { %633 = vmatpush1.bf16.msra.mxu0 %v624_v50  ;;  %664 = vmatprep.mubr.bf16.mxu0 %v1786_v6  ;;  %v746_v55 = vsel %vm745_vm6, %v738_v51, %v740_v53 }
  0xab   : > { %1593 = vmatmul.mubr.msk.bf16.vlgmr.msra.gmra.mrb[8].mxu1 %vm253_vm3, %v1524_v49  ;;  %v742_v54 = vpop.permute.xlu0 %741  ;;  %v753_v60 = vsel %vm257_vm2, %v746_v55, 0 }
  0xac   : > { %1597 = vmatpush3.bf16.msra.mxu1 %v630_v52  ;;  %v747_v56 = vsel %vm745_vm6, %v740_v53, %v742_v54  ;;  %1598 = vmatprep.mubr.msk.bf16.mxu1 %vm1787_vm0, %v1785_v5 }
  0xad   : > { %1533 = vmatprep.subr.msk.bf16.mxu0 %vm257_vm2, %v747_v56  ;;  %v744_v57 = vpop.permute.xlu1 %743  ;;  %1602 = vmatprep.subr.bf16.mxu1 %v1785_v5 }
  0xae   : > { %v748_v58 = vsel %vm745_vm6, %v742_v54, %v744_v57 }
  0xaf   : > { %v867_v61 = vpop.permute.xlu0 %866  ;;  %v759_v62 = vsel %vm257_vm2, %v748_v58, 0 }
  0xb1   : > { %1530 = vmatmul.mubr.msk.bf16.vlgmr.msra.gmra.mrb[12].mxu0 %vm253_vm3, %v1528_v59  ;;  %v869_v63 = vpop.permute.xlu1 %868 }
  0xb2   : > { %762 = vmatpush1.bf16.msra.mxu0 %v753_v60  ;;  %793 = vmatprep.mubr.bf16.mxu0 %v1786_v6  ;;  %v875_v1 = vsel %vm874_vm7, %v867_v61, %v869_v63 }
  0xb3   : > { %1599 = vmatmul.mubr.msk.bf16.vlgmr.msra.gmra.mrb[12].mxu1 %vm253_vm3, %v1528_v59  ;;  %v871_v0 = vpop.permute.xlu0 %870  ;;  %v882_v8 = vsel %vm257_vm2, %v875_v1, 0 }
  0xb4   : > { %1603 = vmatpush3.bf16.msra.mxu1 %v759_v62  ;;  %v876_v2 = vsel %vm874_vm7, %v869_v63, %v871_v0  ;;  %1604 = vmatprep.mubr.msk.bf16.mxu1 %vm1787_vm0, %v1785_v5 }
  0xb5   : > { %1537 = vmatprep.subr.msk.bf16.mxu0 %vm257_vm2, %v876_v2  ;;  %v873_v3 = vpop.permute.xlu1 %872  ;;  %1608 = vmatprep.subr.bf16.mxu1 %v1785_v5 }
  0xb6   : > { %v877_v4 = vsel %vm874_vm7, %v871_v0, %v873_v3 }
  0xb7   : > { %v996_v9 = vpop.permute.xlu0 %995  ;;  %v888_v10 = vsel %vm257_vm2, %v877_v4, 0 }
  0xb9   : > { %1534 = vmatmul.mubr.msk.bf16.vlgmr.msra.gmra.mrb[16].mxu0 %vm253_vm3, %v1532_v7  ;;  %v998_v11 = vpop.permute.xlu1 %997 }
  0xba   : > { %891 = vmatpush1.bf16.msra.mxu0 %v882_v8  ;;  %922 = vmatprep.mubr.bf16.mxu0 %v1786_v6  ;;  %v1004_v13 = vsel %vm1003_vm8, %v996_v9, %v998_v11 }
  0xbb   : > { %1605 = vmatmul.mubr.msk.bf16.vlgmr.msra.gmra.mrb[16].mxu1 %vm253_vm3, %v1532_v7  ;;  %v1000_v12 = vpop.permute.xlu0 %999  ;;  %v1011_v18 = vsel %vm257_vm2, %v1004_v13, 0 }
  0xbc   : > { %1609 = vmatpush3.bf16.msra.mxu1 %v888_v10  ;;  %v1005_v14 = vsel %vm1003_vm8, %v998_v11, %v1000_v12  ;;  %1610 = vmatprep.mubr.msk.bf16.mxu1 %vm1787_vm0, %v1785_v5 }
  0xbd   : > { %1541 = vmatprep.subr.msk.bf16.mxu0 %vm257_vm2, %v1005_v14  ;;  %v1002_v15 = vpop.permute.xlu1 %1001  ;;  %1614 = vmatprep.subr.bf16.mxu1 %v1785_v5 }
  0xbe   : > { %v1006_v16 = vsel %vm1003_vm8, %v1000_v12, %v1002_v15 }
  0xbf   : > { %v1125_v19 = vpop.permute.xlu0 %1124  ;;  %v1017_v20 = vsel %vm257_vm2, %v1006_v16, 0 }
  0xc1   : > { %1538 = vmatmul.mubr.msk.bf16.vlgmr.msra.gmra.mrb[20].mxu0 %vm253_vm3, %v1536_v17  ;;  %v1127_v21 = vpop.permute.xlu1 %1126 }
  0xc2   : > { %1020 = vmatpush1.bf16.msra.mxu0 %v1011_v18  ;;  %1051 = vmatprep.mubr.bf16.mxu0 %v1786_v6  ;;  %v1133_v23 = vsel %vm1132_vm9, %v1125_v19, %v1127_v21 }
  0xc3   : > { %1611 = vmatmul.mubr.msk.bf16.vlgmr.msra.gmra.mrb[20].mxu1 %vm253_vm3, %v1536_v17  ;;  %v1129_v22 = vpop.permute.xlu0 %1128  ;;  %v1140_v28 = vsel %vm257_vm2, %v1133_v23, 0 }
  0xc4   : > { %1615 = vmatpush3.bf16.msra.mxu1 %v1017_v20  ;;  %v1134_v24 = vsel %vm1132_vm9, %v1127_v21, %v1129_v22  ;;  %1616 = vmatprep.mubr.msk.bf16.mxu1 %vm1787_vm0, %v1785_v5 }
  0xc5   : > { %1545 = vmatprep.subr.msk.bf16.mxu0 %vm257_vm2, %v1134_v24  ;;  %v1131_v25 = vpop.permute.xlu1 %1130  ;;  %1620 = vmatprep.subr.bf16.mxu1 %v1785_v5 }
  0xc6   : > { %v1135_v26 = vsel %vm1132_vm9, %v1129_v22, %v1131_v25 }
  0xc7   : > { %v1254_v29 = vpop.permute.xlu0 %1253  ;;  %v1146_v30 = vsel %vm257_vm2, %v1135_v26, 0 }
  0xc9   : > { %1542 = vmatmul.mubr.msk.bf16.vlgmr.msra.gmra.mrb[24].mxu0 %vm253_vm3, %v1540_v27  ;;  %v1256_v31 = vpop.permute.xlu1 %1255 }
  0xca   : > { %1149 = vmatpush1.bf16.msra.mxu0 %v1140_v28  ;;  %1180 = vmatprep.mubr.bf16.mxu0 %v1786_v6  ;;  %v1262_v33 = vsel %vm1261_vm10, %v1254_v29, %v1256_v31 }
  0xcb   : > { %1617 = vmatmul.mubr.msk.bf16.vlgmr.msra.gmra.mrb[24].mxu1 %vm253_vm3, %v1540_v27  ;;  %v1258_v32 = vpop.permute.xlu0 %1257  ;;  %v1269_v38 = vsel %vm257_vm2, %v1262_v33, 0 }
  0xcc   : > { %1621 = vmatpush3.bf16.msra.mxu1 %v1146_v30  ;;  %v1263_v34 = vsel %vm1261_vm10, %v1256_v31, %v1258_v32  ;;  %1622 = vmatprep.mubr.msk.bf16.mxu1 %vm1787_vm0, %v1785_v5 }
  0xcd   : > { %1549 = vmatprep.subr.msk.bf16.mxu0 %vm257_vm2, %v1263_v34  ;;  %v1260_v35 = vpop.permute.xlu1 %1259  ;;  %1626 = vmatprep.subr.bf16.mxu1 %v1785_v5 }
  0xce   : > { %v1264_v36 = vsel %vm1261_vm10, %v1258_v32, %v1260_v35 }
  0xcf   : > { %v1275_v39 = vsel %vm257_vm2, %v1264_v36, 0 }
  0xd1   : > { %1546 = vmatmul.mubr.msk.bf16.vlgmr.msra.gmra.mrb[28].mxu0 %vm253_vm3, %v1544_v37 }
  0xd2   : > { %1278 = vmatpush1.bf16.msra.mxu0 %v1269_v38  ;;  %1309 = vmatprep.mubr.bf16.mxu0 %v1786_v6 }
  0xd3   : > { %1623 = vmatmul.mubr.msk.bf16.vlgmr.msra.gmra.mrb[28].mxu1 %vm253_vm3, %v1544_v37 }
  0xd4   : > { %1627 = vmatpush3.bf16.msra.mxu1 %v1275_v39  ;;  %1628 = vmatprep.mubr.msk.bf16.mxu1 %vm1787_vm0, %v1785_v5 }
  0xd9   : > { %1550 = vmatmul.mubr.msk.bf16.vlgmr.msra.gmra.mrb[32].mxu0 %vm253_vm3, %v1548_v40 }
  0xdb   : > { %1629 = vmatmul.mubr.msk.bf16.vlgmr.msra.gmra.mrb[32].mxu1 %vm253_vm3, %v1548_v40 }
 0x16c   : > { %v301_v41 = vpop.f32.mrb[0].mxu0 }
 0x16d   : > { %v303_v42 = vpop.f32.mrb[1].mxu0 }
 0x16e   : > { %v305_v43 = vpop.f32.mrb[2].mxu0  ;;  %v342_v44 = vpop.f32.mrb[0].mxu1 }
 0x16f   : > { %v306_v45 = vpop.f32.mrb[3].mxu0  ;;  %v1582_v6 = vpop.f32.mrb[1].mxu1 }
 0x170   : > { %v345_v46 = vpop.f32.mrb[2].mxu1 }
 0x171   : > { %v1583_v47 = vpop.f32.mrb[3].mxu1 }
 0x174   : > { %v411_v48 = vpop.f32.mrb[4].mxu0 }
 0x175   : > { %v412_v49 = vadd.f32 %v411_v48, %v301_v41  ;;  %v413_v50 = vpop.f32.mrb[5].mxu0 }
 0x176   : > { %v414_v5 = vadd.f32 %v413_v50, %v303_v42  ;;  %v415_v51 = vpop.f32.mrb[6].mxu0  ;;  %v452_v52 = vpop.f32.mrb[4].mxu1 }
 0x177   : > { %v453_v53 = vadd.f32 %v452_v52, %v342_v44  ;;  %v416_v54 = vpop.f32.mrb[7].mxu0  ;;  %v1588_v55 = vpop.f32.mrb[5].mxu1 }
 0x178   : > { %v455_v56 = vpop.f32.mrb[6].mxu1 }
 0x179   : > { %v1589_v57 = vpop.f32.mrb[7].mxu1 }
 0x17c   : > { %v537_v58 = vpop.f32.mrb[8].mxu0 }
 0x17d   : > { %v584_v59 = vadd.f32 %v537_v58, %v412_v49  ;;  %v539_v60 = vpop.f32.mrb[9].mxu0 }
 0x17e   : > { %v585_v61 = vadd.f32 %v539_v60, %v414_v5  ;;  %v541_v62 = vpop.f32.mrb[10].mxu0  ;;  %v578_v63 = vpop.f32.mrb[8].mxu1 }
 0x17f   : > { %v586_v0 = vadd.f32 %v578_v63, %v453_v53  ;;  %v542_v1 = vpop.f32.mrb[11].mxu0  ;;  %v1594_v2 = vpop.f32.mrb[9].mxu1 }
 0x180   : > { %v581_v3 = vpop.f32.mrb[10].mxu1 }
 0x181   : > { %v1595_v4 = vpop.f32.mrb[11].mxu1 }
 0x184   : > { %v666_v7 = vpop.f32.mrb[12].mxu0 }
 0x185   : > { %v713_v8 = vadd.f32 %v666_v7, %v584_v59  ;;  %v668_v9 = vpop.f32.mrb[13].mxu0 }
 0x186   : > { %v714_v10 = vadd.f32 %v668_v9, %v585_v61  ;;  %v670_v11 = vpop.f32.mrb[14].mxu0  ;;  %v707_v12 = vpop.f32.mrb[12].mxu1 }
 0x187   : > { %v715_v13 = vadd.f32 %v707_v12, %v586_v0  ;;  %v671_v14 = vpop.f32.mrb[15].mxu0  ;;  %v1600_v15 = vpop.f32.mrb[13].mxu1 }
 0x188   : > { %v710_v16 = vpop.f32.mrb[14].mxu1  ;;  %v1365_v61 = vpop.permute.xlu0 %1364 }
 0x189   : > { %v1601_v17 = vpop.f32.mrb[15].mxu1 }
 0x18c   : > { %v795_v18 = vpop.f32.mrb[16].mxu0 }
 0x18d   : > { %v842_v19 = vadd.f32 %v795_v18, %v713_v8  ;;  %v797_v20 = vpop.f32.mrb[17].mxu0 }
 0x18e   : > { %v843_v21 = vadd.f32 %v797_v20, %v714_v10  ;;  %v799_v22 = vpop.f32.mrb[18].mxu0  ;;  %v836_v23 = vpop.f32.mrb[16].mxu1 }
 0x18f   : > { %v844_v24 = vadd.f32 %v836_v23, %v715_v13  ;;  %v800_v25 = vpop.f32.mrb[19].mxu0  ;;  %v1606_v26 = vpop.f32.mrb[17].mxu1 }
 0x190   : > { %v839_v27 = vpop.f32.mrb[18].mxu1 }
 0x191   : > { %v1607_v28 = vpop.f32.mrb[19].mxu1 }
 0x194   : > { %v924_v29 = vpop.f32.mrb[20].mxu0 }
 0x195   : > { %v971_v30 = vadd.f32 %v924_v29, %v842_v19  ;;  %v926_v31 = vpop.f32.mrb[21].mxu0 }
 0x196   : > { %v972_v32 = vadd.f32 %v926_v31, %v843_v21  ;;  %v928_v33 = vpop.f32.mrb[22].mxu0  ;;  %v965_v34 = vpop.f32.mrb[20].mxu1 }
 0x197   : > { %v973_v35 = vadd.f32 %v965_v34, %v844_v24  ;;  %v929_v36 = vpop.f32.mrb[23].mxu0  ;;  %v1612_v37 = vpop.f32.mrb[21].mxu1 }
 0x198   : > { %v968_v38 = vpop.f32.mrb[22].mxu1 }
 0x199   : > { %v1613_v39 = vpop.f32.mrb[23].mxu1 }
 0x19c   : > { %v1053_v40 = vpop.f32.mrb[24].mxu0 }
 0x19d   : > { %v1100_v41 = vadd.f32 %v1053_v40, %v971_v30  ;;  %v1055_v42 = vpop.f32.mrb[25].mxu0 }
 0x19e   : > { %v1101_v43 = vadd.f32 %v1055_v42, %v972_v32  ;;  %v1057_v44 = vpop.f32.mrb[26].mxu0  ;;  %v1094_v45 = vpop.f32.mrb[24].mxu1 }
 0x19f   : > { %v1102_v6 = vadd.f32 %v1094_v45, %v973_v35  ;;  %v1058_v46 = vpop.f32.mrb[27].mxu0  ;;  %v1618_v47 = vpop.f32.mrb[25].mxu1 }
 0x1a0   : > { %v1097_v48 = vpop.f32.mrb[26].mxu1 }
 0x1a1   : > { %v1619_v49 = vpop.f32.mrb[27].mxu1 }
 0x1a4   : > { %v1182_v50 = vpop.f32.mrb[28].mxu0 }
 0x1a5   : > { %v1229_v5 = vadd.f32 %v1182_v50, %v1100_v41  ;;  %v1184_v51 = vpop.f32.mrb[29].mxu0 }
 0x1a6   : > { %v1230_v52 = vadd.f32 %v1184_v51, %v1101_v43  ;;  %v1186_v53 = vpop.f32.mrb[30].mxu0  ;;  %v1223_v54 = vpop.f32.mrb[28].mxu1 }
 0x1a7   : > { %v1231_v55 = vadd.f32 %v1223_v54, %v1102_v6  ;;  %v1187_v56 = vpop.f32.mrb[31].mxu0  ;;  %v1624_v57 = vpop.f32.mrb[29].mxu1 }
 0x1a8   : > { %v1226_v58 = vpop.f32.mrb[30].mxu1 }
 0x1a9   : > { %v1625_v59 = vpop.f32.mrb[31].mxu1 }
 0x1ac   : > { %v1311_v60 = vpop.f32.mrb[32].mxu0 }
 0x1ad   : > { %v1358_v62 = vadd.f32 %v1311_v60, %v1229_v5  ;;  %v1313_v63 = vpop.f32.mrb[33].mxu0 }
 0x1ae   : > { %v1359_v0 = vadd.f32 %v1313_v63, %v1230_v52  ;;  %v1315_v1 = vpop.f32.mrb[34].mxu0  ;;  %v1352_v2 = vpop.f32.mrb[32].mxu1 }
 0x1af   : > { %v1367_v3 = vadd.f32 %v1365_v61, %v1358_v62  ;;  %v1360_v4 = vadd.f32 %v1352_v2, %v1231_v55  ;;  %v1316_v7 = vpop.f32.mrb[35].mxu0  ;;  %v1630_v8 = vpop.f32.mrb[33].mxu1 }
 0x1b0   : > { %v1368_v9 = vadd.f32 %v1365_v61, %v1359_v0  ;;  %v1355_v10 = vpop.f32.mrb[34].mxu1 }
 0x1b1   : > { %v1370_v11 = vmul.f32 0.01, %v1367_v3  ;;  %v1369_v12 = vadd.f32 %v1365_v61, %v1360_v4  ;;  %v1631_v13 = vpop.f32.mrb[35].mxu1 }
 0x1b2   : > { %v1371_v14 = vmul.f32 0.01, %v1368_v9 }
 0x1b3   : > { %v1373_v15 = vmax.f32 %v1367_v3, %v1370_v11  ;;  %v1372_v16 = vmul.f32 0.01, %v1369_v12 }
 0x1b4   : > { %v1374_v17 = vmax.f32 %v1368_v9, %v1371_v14 }
 0x1b5   : > { %v1375_v18 = vmax.f32 %v1369_v12, %v1372_v16 }
 0x1b6   : > { %v1558_v19 = vpack.c.bf16 %v1374_v17, %v1373_v15 }
 0x1b7   : > { %v1559_v20 = vpack.c.bf16 %v1375_v18, %v1375_v18 }
 0x1b8   : > { %1389 = vst [vmem:[%s203_s28] sm:$0xff] %v1558_v19 }
 0x1b9   : > { %1390 = vst [vmem:[%s203_s28 + $0x8] sm:$0xf] %v1559_v20 }
 0x1ba   : > { %1717 = shalt.err (!%p1714_p5)
}
 0x1bb   : > { %s1718_s10 = scalar_lea.hbm %s2004_s5, 192  ;;  %s1722_s19 = scalar_lea.hbm %s2056_s3, 384 }
 0x1bc   : > { %p1719_p6 = scmp.ne.s32.totalorder %s2004_s5, %s1718_s10  ;;  %p1723_p10 = scmp.lt.u32.totalorder %s2004_s5, %s2056_s3 }
 0x1bd   : > { %p1724_p11 = scmp.lt.u32.totalorder %s1722_s19, %s1718_s10  ;;  %p1726_p13 = scmp.lt.u32.totalorder %s1718_s10, %s2004_s5 }
 0x1be   : > { %p1720_p7 = pnand %p1719_p6, %p1857_p4 }
 0x1bf   : > { %p1725_p12 = por %p1724_p11, %p1723_p10 }
 0x1c0   : > { %p1721_p9 = pneg %p1720_p7 }
 0x1c1   : > { %p1727_p0 = por %p1726_p13, %p1725_p12 }
 0x1c3   : > { %p1728_p1 = pnand %p1727_p0, %p1721_p9 }
 0x1c5   : > { %1731 = shalt.err (!%p1728_p1)
}
 0x1c6   : > { %1634 = dma.vmem_to_hbm [thread:$0]  (%p1857_p4), %s2006_s29, 192, %s2004_s5, %s1392_s15  }
 0x1c7 PF: > { %p1640_p2 = scmp.ge.s32.totalorder %s1782_s17, 2  ;;  %s1420_s26 = sand.u32 1, %s1762_s12  }
 0x1c8   : > { %s1421_s27 = scalar_lea.sflag [#allocation3], %s1420_s26 }
 0x1c9   : > { %p1637_p3 = pnand %p1640_p2, %p1864_p8 }
 0x1cb   : > { %1757 = dma.done.wait (!%p1637_p3), %s1421_s27, 192  }
 0x1cc   : > { %1759 = vsyncadd (!%p1637_p3), %s1421_s27, 4294967104  ;;  %s16_s17 = sadd.s32 1, %s1782_s17   ;;  %s2059_s12 = smov %s1766_s13 }
 0x1cd   : > { %p13_p5 = scmp.ge.s32.totalorder %s16_s17, 4   ;;  %s2060_s13 = smov %s1770_s14 }
 0x1ce   : > { %s2061_s14 = smov %s1870_s25  ;;  %s2062_s15 = smov %s1778_s16 }
 0x1cf   : > { %s2063_s16 = smov %s2065_s20  ;;  %15 = sbr.rel (!%p13_p5) target bundleno = 4 (0x4), region = 81 }
 0x1d6   :  { %1426 = vsyncpa [#allocation3], 1 }
 0x1d7   :  { %1428 = vsyncpa [#allocation3 + $0x1], 1 }

</bundles_post_ra>
